<compile_context>
chip_gen: v7x
topology: tpu7x:2x2x1
jax: 0.10.0
libtpu: 0.0.40
codegen_flags: <defaults>
</compile_context>

<pallas_src>
import jax
import jax.numpy as jnp
from jax.experimental import pallas as pl
from jax.experimental.pallas import tpu as pltpu


# ----------------------------- Pallas kernels ------------------------------ #

def _stats_kernel(x_ref, sum_ref, sq_ref, acc_sum, acc_sq):
    """Per-row sum and sum-of-squares over the lane (spatial) axis.

    Grid: (row_tiles, lane_tiles); lane axis is the reduction ('arbitrary') axis.
    Accumulates in VMEM scratch, writes out on the last lane tile.
    """
    j = pl.program_id(1)

    @pl.when(j == 0)
    def _():
        acc_sum[...] = jnp.zeros_like(acc_sum)
        acc_sq[...] = jnp.zeros_like(acc_sq)

    x = x_ref[...]                                        # (tr, tl) f32
    acc_sum[...] += jnp.sum(x, axis=1, keepdims=True)     # (tr, 1)
    acc_sq[...] += jnp.sum(x * x, axis=1, keepdims=True)  # (tr, 1)

    @pl.when(j == pl.num_programs(1) - 1)
    def _():
        sum_ref[...] = acc_sum[...]
        sq_ref[...] = acc_sq[...]


def _apply_kernel(x_ref, scale_ref, shift_ref, o_ref):
    """Fused BN + conditional affine: out = x * scale + shift (per-row scale/shift)."""
    o_ref[...] = x_ref[...] * scale_ref[...] + shift_ref[...]


# ------------------------------- wrapper ----------------------------------- #

def _spectral_normalize(w):
    # w: (out_features, in_features). Divide by largest singular value.
    sigma = jnp.linalg.norm(w, ord=2)
    return w / sigma


def _block(dim, target, quantum):
    """Pick a block size: full dim if small, else a multiple-of-`quantum`
    divisor of `dim` that is <= target (falls back to full dim)."""
    if dim <= target:
        return dim
    cand = target - (target % quantum)
    while cand >= quantum:
        if dim % cand == 0:
            return cand
        cand -= quantum
    return dim


def conditional_batch_norm(x, y, params, *, eps=1e-5):
    """x: (N, C, H, W) float32 NCHW, y: (N,) int32 class ids."""
    n, c, h, w = x.shape
    hw = h * w
    r = n * c
    x2d = x.reshape(r, hw)

    # Tile sizes: sublane-friendly rows, lane-dense (>=128, multiple of 128)
    # spatial tiles. Per-tile footprint stays small (few MiB) so double-buffered
    # input + output fits v5e's 16 MiB / v7x's 32 MiB scoped VMEM defaults.
    tr = _block(r, 256, 8)
    tl = _block(hw, 2048, 128)
    grid = (r // tr, hw // tl)

    cparams_stats = pltpu.CompilerParams(
        dimension_semantics=("parallel", "arbitrary"),
        vmem_limit_bytes=32 * 1024 * 1024,
    )
    cparams_apply = pltpu.CompilerParams(
        dimension_semantics=("parallel", "parallel"),
        vmem_limit_bytes=32 * 1024 * 1024,
    )

    # ---- phase 1: per-(n, c) sum / sum-of-squares over spatial dims ----------
    row_sum, row_sq = pl.pallas_call(
        _stats_kernel,
        out_shape=(jax.ShapeDtypeStruct((r, 1), jnp.float32),
                   jax.ShapeDtypeStruct((r, 1), jnp.float32)),
        grid=grid,
        in_specs=[pl.BlockSpec((tr, tl), lambda i, j: (i, j))],
        out_specs=(pl.BlockSpec((tr, 1), lambda i, j: (i, 0)),
                   pl.BlockSpec((tr, 1), lambda i, j: (i, 0))),
        scratch_shapes=[pltpu.VMEM((tr, 1), jnp.float32),
                        pltpu.VMEM((tr, 1), jnp.float32)],
        compiler_params=cparams_stats,
    )(x2d)

    # ---- tiny per-channel finalize (wrapper-side glue) ------------------------
    cnt = jnp.float32(n * hw)
    inv_cnt = 1.0 / cnt
    ch_sum = jnp.sum(row_sum.reshape(n, c), axis=0)            # (C,)
    ch_sq = jnp.sum(row_sq.reshape(n, c), axis=0)              # (C,)
    mean = ch_sum * inv_cnt
    var = ch_sq * inv_cnt - mean * mean                        # biased variance
    inv_std = jax.lax.rsqrt(var + eps)                         # (C,)

    # ---- conditional gamma / beta (tiny matmuls, hoisted out of the kernel) ---
    emb = params["emb_table"][y]                               # (N, E)
    wg = _spectral_normalize(params["wg"])                     # (C, E)
    wb = _spectral_normalize(params["wb"])                     # (C, E)
    gamma = emb @ wg.T + params["bg"]                          # (N, C)
    beta = emb @ wb.T + params["bb"]                           # (N, C)

    # ---- fuse BN + affine into one multiply-add per element -------------------
    scale = gamma * inv_std[None, :]                           # (N, C)
    shift = beta - mean[None, :] * scale                       # (N, C)
    scale2d = scale.reshape(r, 1).astype(jnp.float32)
    shift2d = shift.reshape(r, 1).astype(jnp.float32)

    # ---- phase 2: fully parallel tiled apply pass ------------------------------
    out2d = pl.pallas_call(
        _apply_kernel,
        out_shape=jax.ShapeDtypeStruct((r, hw), x.dtype),
        grid=grid,
        in_specs=[pl.BlockSpec((tr, tl), lambda i, j: (i, j)),
                  pl.BlockSpec((tr, 1), lambda i, j: (i, 0)),
                  pl.BlockSpec((tr, 1), lambda i, j: (i, 0))],
        out_specs=pl.BlockSpec((tr, tl), lambda i, j: (i, j)),
        compiler_params=cparams_apply,
    )(x2d, scale2d, shift2d)

    return out2d.reshape(n, c, h, w)


# ------------------------------- reference --------------------------------- #

def _reference(x, y, params, *, eps=1e-5):
    mean = jnp.mean(x, axis=(0, 2, 3), keepdims=True)
    var = jnp.mean((x - mean) ** 2, axis=(0, 2, 3), keepdims=True)
    x_norm = (x - mean) / jnp.sqrt(var + eps)
    emb = params["emb_table"][y]
    wg = _spectral_normalize(params["wg"])
    wb = _spectral_normalize(params["wb"])
    gamma = emb @ wg.T + params["bg"]
    beta = emb @ wb.T + params["bb"]
    return gamma[:, :, None, None] * x_norm + beta[:, :, None, None]


if __name__ == "__main__":
    num_features = 4          # C
    n_classes = 43
    embedding_dim = 64
    batch, height, width = 2, 16, 16

    key = jax.random.PRNGKey(0)
    k_x, k_emb, k_wg, k_wb, k_y = jax.random.split(key, 5)

    x = jax.random.normal(k_x, (batch, num_features, height, width),
                          dtype=jnp.float32)
    y = jax.random.randint(k_y, (batch,), 0, n_classes, dtype=jnp.int32)

    # Deterministic synthetic parameters (shapes match the PyTorch module).
    # The zero-init of the spectral-normed linear weights would be rescaled by
    # weight_orig / sigma at forward time, so nonzero deterministic weights are
    # used; biases keep their (ones / zeros) init.
    params = {
        "emb_table": jax.random.normal(k_emb, (n_classes, embedding_dim),
                                       dtype=jnp.float32),
        "wg": 0.1 * jax.random.normal(k_wg, (num_features, embedding_dim),
                                      dtype=jnp.float32),
        "bg": jnp.ones((num_features,), dtype=jnp.float32),
        "wb": 0.1 * jax.random.normal(k_wb, (num_features, embedding_dim),
                                      dtype=jnp.float32),
        "bb": jnp.zeros((num_features,), dtype=jnp.float32),
    }

    out = jax.block_until_ready(conditional_batch_norm(x, y, params))
    ref = jax.block_until_ready(_reference(x, y, params))

    assert out.shape == (batch, num_features, height, width)
    assert jnp.allclose(out, ref, rtol=1e-4, atol=1e-4)

    print("KERNEL_OK")
</pallas_src>

<mosaic_0001>
module attributes {stable_mosaic.version = 11 : i64} {
  func.func @_stats_kernel(%arg0: i32, %arg1: i32, %arg2: memref<8x256xf32, #tpu.memory_space<vmem>>, %arg3: memref<8x1xf32, #tpu.memory_space<vmem>>, %arg4: memref<8x1xf32, #tpu.memory_space<vmem>>, %arg5: memref<8x1xf32, #tpu.memory_space<vmem>>, %arg6: memref<8x1xf32, #tpu.memory_space<vmem>>) attributes {dimension_semantics = [#tpu.dimension_semantics<parallel>, #tpu.dimension_semantics<arbitrary>], iteration_bounds = array<i64: 1, 1>, scalar_prefetch = 0 : i64, scratch_operands = 2 : i64, tpu.core_type = #tpu.core_type<tc>, window_params = [{transform_indices = @transform_0, window_bounds = array<i64: 8, 256>}, {transform_indices = @transform_1, window_bounds = array<i64: 8, 1>}, {transform_indices = @transform_2, window_bounds = array<i64: 8, 1>}]} {
    %c0_i32 = arith.constant 0 : i32
    %0 = arith.cmpi eq, %arg1, %c0_i32 : i32
    %1 = arith.extui %0 : i1 to i32
    %c0_i32_0 = arith.constant 0 : i32
    %2 = arith.cmpi ne, %1, %c0_i32_0 : i32
    scf.if %2 {
      %cst_13 = arith.constant 0.000000e+00 : f32
      %18 = vector.broadcast %cst_13 : f32 to vector<8x1xf32>
      %c0_14 = arith.constant 0 : index
      %c0_15 = arith.constant 0 : index
      %19 = vector.load %arg5[%c0_14, %c0_15] : memref<8x1xf32, #tpu.memory_space<vmem>>, vector<8x1xf32>
      tpu.vector_store %arg5[%c0_14, %c0_15], %18 {strides = array<i32>} : memref<8x1xf32, #tpu.memory_space<vmem>>, vector<8x1xf32>,
      %cst_16 = arith.constant 0.000000e+00 : f32
      %20 = vector.broadcast %cst_16 : f32 to vector<8x1xf32>
      %c0_17 = arith.constant 0 : index
      %c0_18 = arith.constant 0 : index
      %21 = vector.load %arg6[%c0_17, %c0_18] : memref<8x1xf32, #tpu.memory_space<vmem>>, vector<8x1xf32>
      tpu.vector_store %arg6[%c0_17, %c0_18], %20 {strides = array<i32>} : memref<8x1xf32, #tpu.memory_space<vmem>>, vector<8x1xf32>,
    } else {
    }
    %c0 = arith.constant 0 : index
    %c0_1 = arith.constant 0 : index
    %3 = vector.load %arg2[%c0, %c0_1] : memref<8x256xf32, #tpu.memory_space<vmem>>, vector<8x256xf32>
    %c0_2 = arith.constant 0 : index
    %c0_3 = arith.constant 0 : index
    %4 = vector.load %arg5[%c0_2, %c0_3] : memref<8x1xf32, #tpu.memory_space<vmem>>, vector<8x1xf32>
    %cst = arith.constant dense<0.000000e+00> : vector<8xf32>
    %5 = vector.multi_reduction <add>, %3, %cst [1] : vector<8x256xf32> to vector<8xf32>
    %6 = vector.shape_cast %5 : vector<8xf32> to vector<8x1xf32>
    %7 = arith.addf %4, %6 : vector<8x1xf32>
    %c0_4 = arith.constant 0 : index
    %c0_5 = arith.constant 0 : index
    %8 = vector.load %arg5[%c0_4, %c0_5] : memref<8x1xf32, #tpu.memory_space<vmem>>, vector<8x1xf32>
    tpu.vector_store %arg5[%c0_4, %c0_5], %7 {strides = array<i32>} : memref<8x1xf32, #tpu.memory_space<vmem>>, vector<8x1xf32>,
    %c0_6 = arith.constant 0 : index
    %c0_7 = arith.constant 0 : index
    %9 = vector.load %arg6[%c0_6, %c0_7] : memref<8x1xf32, #tpu.memory_space<vmem>>, vector<8x1xf32>
    %10 = arith.mulf %3, %3 : vector<8x256xf32>
    %cst_8 = arith.constant dense<0.000000e+00> : vector<8xf32>
    %11 = vector.multi_reduction <add>, %10, %cst_8 [1] : vector<8x256xf32> to vector<8xf32>
    %12 = vector.shape_cast %11 : vector<8xf32> to vector<8x1xf32>
    %13 = arith.addf %9, %12 : vector<8x1xf32>
    %c0_9 = arith.constant 0 : index
    %c0_10 = arith.constant 0 : index
    %14 = vector.load %arg6[%c0_9, %c0_10] : memref<8x1xf32, #tpu.memory_space<vmem>>, vector<8x1xf32>
    tpu.vector_store %arg6[%c0_9, %c0_10], %13 {strides = array<i32>} : memref<8x1xf32, #tpu.memory_space<vmem>>, vector<8x1xf32>,
    %c0_i32_11 = arith.constant 0 : i32
    %15 = arith.cmpi eq, %arg1, %c0_i32_11 : i32
    %16 = arith.extui %15 : i1 to i32
    %c0_i32_12 = arith.constant 0 : i32
    %17 = arith.cmpi ne, %16, %c0_i32_12 : i32
    scf.if %17 {
      %c0_13 = arith.constant 0 : index
      %c0_14 = arith.constant 0 : index
      %18 = vector.load %arg5[%c0_13, %c0_14] : memref<8x1xf32, #tpu.memory_space<vmem>>, vector<8x1xf32>
      %c0_15 = arith.constant 0 : index
      %c0_16 = arith.constant 0 : index
      %19 = vector.load %arg3[%c0_15, %c0_16] : memref<8x1xf32, #tpu.memory_space<vmem>>, vector<8x1xf32>
      tpu.vector_store %arg3[%c0_15, %c0_16], %18 {strides = array<i32>} : memref<8x1xf32, #tpu.memory_space<vmem>>, vector<8x1xf32>,
      %c0_17 = arith.constant 0 : index
      %c0_18 = arith.constant 0 : index
      %20 = vector.load %arg6[%c0_17, %c0_18] : memref<8x1xf32, #tpu.memory_space<vmem>>, vector<8x1xf32>
      %c0_19 = arith.constant 0 : index
      %c0_20 = arith.constant 0 : index
      %21 = vector.load %arg4[%c0_19, %c0_20] : memref<8x1xf32, #tpu.memory_space<vmem>>, vector<8x1xf32>
      tpu.vector_store %arg4[%c0_19, %c0_20], %20 {strides = array<i32>} : memref<8x1xf32, #tpu.memory_space<vmem>>, vector<8x1xf32>,
    } else {
    }
    return
  }
  func.func @transform_0(%arg0: i32, %arg1: i32) -> (i32, i32) {
    %c0_i32 = arith.constant 0 : i32
    return %arg0, %arg1 : i32, i32
  }
  func.func @transform_1(%arg0: i32, %arg1: i32) -> (i32, i32) {
    %c0_i32 = arith.constant 0 : i32
    %c0_i32_0 = arith.constant 0 : i32
    return %arg0, %c0_i32 : i32, i32
  }
  func.func @transform_2(%arg0: i32, %arg1: i32) -> (i32, i32) {
    %c0_i32 = arith.constant 0 : i32
    %c0_i32_0 = arith.constant 0 : i32
    return %arg0, %c0_i32 : i32, i32
  }
}

</mosaic_0001>

<bundles_post_ra>
// kernel: tpu_custom_call.1
= control target key start
LH: loop header
LB: loop body
LE: loop exit
PB: predicated region body
PF: predicated region fallthrough
CT: control target
= control target key end

     0   :  { %8 = vsyncpa [#allocation5], 0  ;;  %s88_s9 = smov [#allocation4]   ;;  %s129_s0 = inlined_call_operand.hbm [shape: f32[8,256], index: 0, kind: input, shape index: {}]   ;;  %s130_s1 = inlined_call_operand.vmem [shape: f32[8,1], index: 1, kind: output, shape index: {0}]   ;;  %s131_s2 = inlined_call_operand.vmem [shape: f32[8,1], index: 2, kind: output, shape index: {1}]  }
   0x1   :  { %s15_s10 = sshll.u32 %s88_s9, 4  ;;  %s64_s13 = scalar_lea.hbm %s129_s0, 256  ;;  %s16_s10 = int_to_ptr.vmem [resolvable:$true] %s15_s10 }
   0x2   :  { %p65_p0 = scmp.ne.s32.totalorder %s129_s0, %s64_s13  ;;  %p68_p1 = scmp.lt.u32.totalorder %s64_s13, %s129_s0 }
   0x4   :  { %p70_p2 = pnand %p68_p1, %p65_p0 }
   0x6   :  { %73 = shalt.err (!%p70_p2)
}
   0x7   :  { %s74_s18 = scalar_lea.vmem %s16_s10, 256  ;;  %p79_p4 = scmp.lt.s32.totalorder %s16_s10, %s16_s10 }
   0x8   :  { %p75_p3 = scmp.ne.s32.totalorder %s16_s10, %s74_s18  ;;  %p80_p5 = scmp.lt.s32.totalorder %s74_s18, %s74_s18 }
   0xa   :  { %p81_p6 = por %p80_p5, %p79_p4 }
   0xc   :  { %p82_p7 = pnand %p81_p6, %p75_p3 }
   0xe   :  { %85 = shalt.err (!%p82_p7)
}
   0xf   :  { %18 = dma.hbm_to_vmem [thread:$0]  %s129_s0, 256, %s16_s10, [#allocation5]  }
  0x10   :  { %86 = dma.done.wait [#allocation5], 256  }
  0x11   :  { %87 = vsyncadd [#allocation5], 4294967040  ;;  %vm26_vm0 = vcmask 7168   ;;  %v89_v0 = vmov 0.0   ;;  %v29_v1 = vld [vmem:[#allocation4] sm:$0xff]  ;;  %v30_v2 = vld [vmem:[#allocation4 + $0x8] sm:$0xff] }
  0x12   :  { %27 = vst.msk [vmem:[#allocation2] sm:$0xff] %vm26_vm0, %v89_v0  ;;  %28 = vst.msk [vmem:[#allocation3] sm:$0xff] %vm26_vm0, %v89_v0  ;;  %v32_v3 = vadd.f32 %v30_v2, %v29_v1  ;;  %v39_v4 = vmul.f32 %v29_v1, %v29_v1  ;;  %v40_v5 = vmul.f32 %v30_v2, %v30_v2 }
  0x14   :  { %33 = vadd.xlane.f32.xlu0 %v32_v3  ;;  %v41_v6 = vadd.f32 %v40_v5, %v39_v4 }
  0x18   :  { %42 = vadd.xlane.f32.xlu0 %v41_v6 }
  0x19   :  { %v31_v7 = vld [vmem:[#allocation2] sm:$0xff]  ;;  %v38_v10 = vld [vmem:[#allocation3] sm:$0xff] }
  0xa1   :  { %v34_v8 = vpop.xlane.xlu0 %33 }
  0xa2   :  { %v35_v9 = vadd.f32 %v34_v8, %v31_v7 }
  0xa4   :  { %37 = vst.msk [vmem:[#allocation2] sm:$0xff] %vm26_vm0, %v35_v9 }
  0xa5   :  { %v43_v11 = vpop.xlane.xlu0 %42 }
  0xa6   :  { %v44_v12 = vadd.f32 %v43_v11, %v38_v10 }
  0xa8   :  { %45 = vst.msk [vmem:[#allocation3] sm:$0xff] %vm26_vm0, %v44_v12 }
  0xab   :  { %v49_v13 = vld [vmem:[#allocation2] sm:$0xff] }
  0xac   :  { %50 = vst.msk [vmem:[%s130_s1] sm:$0xff] %vm26_vm0, %v49_v13 }
  0xaf   :  { %v51_v14 = vld [vmem:[#allocation3] sm:$0xff] }
  0xb0   :  { %52 = vst.msk [vmem:[%s131_s2] sm:$0xff] %vm26_vm0, %v51_v14 }
  0xb1   :  { %61 = vsyncpa [#allocation5], 1 }

</bundles_post_ra>
